<compile_context>
chip_gen: v7x
topology: tpu7x:2x2x1
jax: 0.10.0
libtpu: 0.0.40
codegen_flags: <defaults>
</compile_context>

<pallas_src>
import math
from typing import NamedTuple

import jax
import jax.numpy as jnp
from jax.experimental import pallas as pl
from jax.experimental.pallas import tpu as pltpu


_SQRT_HALF = 0.7071067811865476
_MIB = 1024 * 1024


def _round_up(x, n):
    return ((x + n - 1) // n) * n


# -----------------------------------------------------------------------------
# Exact GELU (nn.GELU() default, approximate='none') built only from ops with
# guaranteed Mosaic lowerings.  erf via Abramowitz & Stegun 7.1.26
# (|err| <= 1.5e-7); the divide is moved to the EUP with pl.reciprocal.
# -----------------------------------------------------------------------------
def _erf_approx(z):
    a1, a2, a3, a4, a5 = (0.254829592, -0.284496736, 1.421413741,
                          -1.453152027, 1.061405429)
    p = 0.3275911
    s = jnp.where(z >= 0.0, 1.0, -1.0)
    za = jnp.abs(z)
    t = pl.reciprocal(1.0 + p * za, approx=True)      # EUP slot, frees VALU
    poly = ((((a5 * t + a4) * t + a3) * t + a2) * t + a1) * t
    return s * (1.0 - poly * jnp.exp(-za * za))


def _gelu_exact(x):
    # 0.5 * x * (1 + erf(x / sqrt(2)))
    return 0.5 * x * (1.0 + _erf_approx(x * _SQRT_HALF))


# -----------------------------------------------------------------------------
# Kernel
# -----------------------------------------------------------------------------
def _mlp_kernel(x_ref, w1t_ref, b1_ref, w2t_ref, b2_ref, o_ref, acc_ref):
    # Grid: (i over M tiles, n over output-column tiles, j over hidden tiles).
    # j is the reduction axis of the second matmul, so the output block (i, n)
    # is resident across it and acc_ref accumulates partial c_proj results.
    j = pl.program_id(2)

    @pl.when(j == 0)
    def _():
        acc_ref[...] = jnp.zeros_like(acc_ref)

    x = x_ref[...]
    if x.dtype != w1t_ref.dtype:
        x = x.astype(w1t_ref.dtype)            # keep the bf16 MXU path

    # c_fc slice: (tm, C) @ (C, th) -> (tm, th), f32 accumulation on the MXU.
    h = jnp.dot(x, w1t_ref[...], preferred_element_type=jnp.float32)
    h = h + b1_ref[...].astype(jnp.float32)
    h = _gelu_exact(h)
    h = h.astype(w2t_ref.dtype)                # bf16 into the second matmul

    # Partial c_proj: (tm, th) @ (th, tn) accumulated into (tm, tn).
    acc_ref[...] += jnp.dot(h, w2t_ref[...], preferred_element_type=jnp.float32)

    @pl.when(j == pl.num_programs(2) - 1)
    def _():
        o_ref[...] = (acc_ref[...] + b2_ref[...].astype(jnp.float32)
                      ).astype(o_ref.dtype)


# -----------------------------------------------------------------------------
# One-time parameter preparation (hoisted out of the per-call path)
# -----------------------------------------------------------------------------
class MLPParams(NamedTuple):
    w1t: jax.Array   # (C, H_pad)  c_fc weight, transposed (+ zero hidden pad)
    b1: jax.Array    # (1, H_pad)  c_fc bias (+ zero hidden pad)
    w2t: jax.Array   # (H_pad, C)  c_proj weight, transposed (+ zero hidden pad)
    b2: jax.Array    # (1, C)      c_proj bias


def prepare_mlp_params(w_fc, b_fc, w_proj, b_proj, *, weight_dtype=jnp.bfloat16):
    """Transpose for row-major MXU matmuls, zero-pad the hidden dim to a
    multiple of 128 lanes (pad rows/cols contribute nothing), and cast the
    weight matrices to `weight_dtype` (bf16 default -> halves weight HBM
    traffic).  Biases keep their original dtype; they are added in f32."""
    h, c = w_fc.shape
    assert b_fc.shape == (h,)
    assert w_proj.shape == (c, h)
    assert b_proj.shape == (c,)

    h_pad = _round_up(h, 128)
    w1t = jnp.asarray(w_fc, dtype=weight_dtype).T       # (C, H)
    w2t = jnp.asarray(w_proj, dtype=weight_dtype).T     # (H, C)
    b1 = jnp.asarray(b_fc).reshape(1, h)
    b2 = jnp.asarray(b_proj).reshape(1, c)
    if h_pad != h:
        w1t = jnp.pad(w1t, ((0, 0), (0, h_pad - h)))
        b1 = jnp.pad(b1, ((0, 0), (0, h_pad - h)))
        w2t = jnp.pad(w2t, ((0, h_pad - h), (0, 0)))
    return MLPParams(w1t=w1t, b1=b1, w2t=w2t, b2=b2)


# -----------------------------------------------------------------------------
# Generation-aware sizing
# -----------------------------------------------------------------------------
def _vmem_capacity_bytes():
    try:
        cap = int(getattr(pltpu.get_tpu_info(), "vmem_capacity_bytes", 0))
        if cap > 0:
            return cap
    except Exception:
        pass
    return 64 * _MIB   # conservative fallback (v7x per-TensorCore)


def _vmem_estimate(tm, c, th, tn, x_isz, w_isz, out_isz):
    return int(
        2 * tm * c * x_isz            # x tile (double-buffered)
        + 2 * c * th * w_isz          # W_fc.T slice
        + 2 * 8 * th * 4              # b_fc slice (sublane-padded)
        + 2 * th * tn * w_isz         # W_proj.T slice
        + 2 * 8 * tn * 4              # b_proj slice
        + 2 * tm * tn * out_isz       # output tile
        + tm * tn * 4                 # f32 accumulator scratch
        + tm * th * (4 + w_isz)       # GELU intermediate (f32) + cast temp
    )


def _choose_tiles(m, c, h_pad, x_isz, w_isz, out_isz, cap_limit):
    """Pick (tm, th, tn) so ~1.2x the estimated footprint fits cap_limit.
    Preference: keep tm large (flops-per-weight-byte ~ tm), keep tn == C
    (no redundant c_fc work); shrink th first, split tn second, shrink tm
    last."""
    m8 = max(8, _round_up(m, 8))
    tm_top = 1024 if cap_limit >= 96 * _MIB else 512
    tm_opts = []
    for t in (tm_top, tm_top // 2, 256, 128, 64, 32, 16, 8):
        t = min(t, m8)
        if t % 8 == 0 and t not in tm_opts:
            tm_opts.append(t)

    th_opts = [t for t in (512, 384, 256, 128) if t <= h_pad and h_pad % t == 0]
    if not th_opts:
        th_opts = [h_pad]

    tn_extra = []
    if c % 256 == 0:
        for t in sorted({c // 2, c // 4, 1024, 512, 256}, reverse=True):
            if 256 <= t < c and c % t == 0 and t % 256 == 0:
                tn_extra.append(t)
    tn_opts = [c] + tn_extra

    fallback = None
    for tm in tm_opts:
        for tn in tn_opts:
            for th in th_opts:
                est = _vmem_estimate(tm, c, th, tn, x_isz, w_isz, out_isz)
                if fallback is None or est < fallback[3]:
                    fallback = (tm, th, tn, est)
                if est * 1.2 <= cap_limit:
                    return tm, th, tn, est
    return fallback


# -----------------------------------------------------------------------------
# Forward
# -----------------------------------------------------------------------------
def mlp_forward(x, params):
    """GPT-2 MLP forward: gelu(x @ W_fc.T + b_fc) @ W_proj.T + b_proj.

    `params` is a prepared MLPParams (see prepare_mlp_params).  x: (..., C).
    """
    w1t, b1, w2t, b2 = params
    c, h_pad = w1t.shape
    assert w2t.shape == (h_pad, c)
    assert x.shape[-1] == c

    lead = x.shape[:-1]
    x2d = x.reshape(-1, c)
    m = x2d.shape[0]

    x_isz = jnp.dtype(x.dtype).itemsize
    w_isz = jnp.dtype(w1t.dtype).itemsize
    out_isz = x_isz

    cap = _vmem_capacity_bytes()
    cap_limit = min(int(cap * 0.85), cap - 8 * _MIB)
    tm, th, tn, est = _choose_tiles(m, c, h_pad, x_isz, w_isz, out_isz,
                                    cap_limit)
    vmem_limit = int(min(cap_limit, max(int(est * 1.3), 32 * _MIB)))

    grid = (pl.cdiv(m, tm), c // tn, h_pad // th)

    out = pl.pallas_call(
        _mlp_kernel,
        out_shape=jax.ShapeDtypeStruct((m, c), x.dtype),
        grid_spec=pltpu.PrefetchScalarGridSpec(
            num_scalar_prefetch=0,
            grid=grid,
            in_specs=[
                pl.BlockSpec((tm, c), lambda i, n, j: (i, 0)),    # x rows (resident)
                pl.BlockSpec((c, th), lambda i, n, j: (0, j)),    # W_fc.T slice
                pl.BlockSpec((1, th), lambda i, n, j: (0, j)),    # b_fc slice
                pl.BlockSpec((th, tn), lambda i, n, j: (j, n)),   # W_proj.T slice
                pl.BlockSpec((1, tn), lambda i, n, j: (0, n)),    # b_proj slice
            ],
            out_specs=pl.BlockSpec((tm, tn), lambda i, n, j: (i, n)),
            scratch_shapes=[pltpu.VMEM((tm, tn), jnp.float32)],
        ),
        compiler_params=pltpu.CompilerParams(
            dimension_semantics=("parallel", "parallel", "arbitrary"),
            vmem_limit_bytes=vmem_limit,
        ),
    )(x2d, w1t, b1, w2t, b2)

    return out.reshape(*lead, c)


def init_mlp_params(key, n_embd, dtype=jnp.float32):
    """Deterministic init matching PyTorch nn.Linear defaults:
    weight/bias ~ U(-1/sqrt(fan_in), 1/sqrt(fan_in))."""
    hidden = 4 * n_embd
    k1, k2, k3, k4 = jax.random.split(key, 4)
    bound1 = 1.0 / math.sqrt(n_embd)
    bound2 = 1.0 / math.sqrt(hidden)
    w_fc = jax.random.uniform(k1, (hidden, n_embd), dtype, -bound1, bound1)
    b_fc = jax.random.uniform(k2, (hidden,), dtype, -bound1, bound1)
    w_proj = jax.random.uniform(k3, (n_embd, hidden), dtype, -bound2, bound2)
    b_proj = jax.random.uniform(k4, (n_embd,), dtype, -bound2, bound2)
    return w_fc, b_fc, w_proj, b_proj


if __name__ == "__main__":
    key = jax.random.PRNGKey(0)
    k_x, k_p = jax.random.split(key)

    batch, seq, n_embd = 2, 8, 32
    x = jax.random.normal(k_x, (batch, seq, n_embd), dtype=jnp.float32)
    w_fc, b_fc, w_proj, b_proj = init_mlp_params(k_p, n_embd)

    # One-time weight prep (transpose + hidden pad + bf16 cast), hoisted out
    # of the forward path per the perf review.
    params = prepare_mlp_params(w_fc, b_fc, w_proj, b_proj,
                                weight_dtype=jnp.bfloat16)

    y = mlp_forward(x, params)
    y = jax.block_until_ready(y)
    assert y.shape == (batch, seq, n_embd)

    # Reference 1: same bf16 weights the kernel streams (tight check of the
    # kernel math: both matmuls + exact GELU + bias adds).
    x2d = x.reshape(-1, n_embd)
    w1 = params.w1t.astype(jnp.float32)
    w2 = params.w2t.astype(jnp.float32)
    h_ref = jax.nn.gelu(x2d @ w1 + params.b1.astype(jnp.float32),
                        approximate=False)
    y_ref_bf16w = (h_ref @ w2 + params.b2.astype(jnp.float32)
                   ).reshape(batch, seq, n_embd)
    assert jnp.allclose(y, y_ref_bf16w, atol=2e-2, rtol=2e-2), float(
        jnp.max(jnp.abs(y - y_ref_bf16w)))

    # Reference 2: original f32 module semantics (bf16-class tolerance -- the
    # kernel streams bf16 weights by design).
    h_full = jax.nn.gelu(x @ w_fc.T + b_fc, approximate=False)
    y_ref_f32 = h_full @ w_proj.T + b_proj
    assert jnp.allclose(y, y_ref_f32, atol=5e-2, rtol=5e-2), float(
        jnp.max(jnp.abs(y - y_ref_f32)))

    print("KERNEL_OK")
</pallas_src>

<mosaic_0001>
module attributes {stable_mosaic.version = 11 : i64} {
  func.func @_mlp_kernel(%arg0: i32, %arg1: i32, %arg2: i32, %arg3: memref<16x32xf32, #tpu.memory_space<vmem>>, %arg4: memref<32x128xbf16, #tpu.memory_space<vmem>>, %arg5: memref<1x128xf32, #tpu.memory_space<vmem>>, %arg6: memref<128x32xbf16, #tpu.memory_space<vmem>>, %arg7: memref<1x32xf32, #tpu.memory_space<vmem>>, %arg8: memref<16x32xf32, #tpu.memory_space<vmem>>, %arg9: memref<16x32xf32, #tpu.memory_space<vmem>>) attributes {dimension_semantics = [#tpu.dimension_semantics<parallel>, #tpu.dimension_semantics<parallel>, #tpu.dimension_semantics<arbitrary>], iteration_bounds = array<i64: 1, 1, 1>, scalar_prefetch = 0 : i64, scratch_operands = 1 : i64, tpu.core_type = #tpu.core_type<tc>, window_params = [{transform_indices = @transform_0, window_bounds = array<i64: 16, 32>}, {transform_indices = @transform_1, window_bounds = array<i64: 32, 128>}, {transform_indices = @transform_2, window_bounds = array<i64: 1, 128>}, {transform_indices = @transform_3, window_bounds = array<i64: 128, 32>}, {transform_indices = @transform_4, window_bounds = array<i64: 1, 32>}, {transform_indices = @transform_5, window_bounds = array<i64: 16, 32>}]} {
    %c0_i32 = arith.constant 0 : i32
    %0 = arith.cmpi eq, %arg2, %c0_i32 : i32
    %1 = arith.extui %0 : i1 to i32
    %c0_i32_0 = arith.constant 0 : i32
    %2 = arith.cmpi ne, %1, %c0_i32_0 : i32
    scf.if %2 {
      %cst_30 = arith.constant 0.000000e+00 : f32
      %59 = vector.broadcast %cst_30 : f32 to vector<16x32xf32>
      %c0_31 = arith.constant 0 : index
      %c0_32 = arith.constant 0 : index
      %60 = vector.load %arg9[%c0_31, %c0_32] : memref<16x32xf32, #tpu.memory_space<vmem>>, vector<16x32xf32>
      tpu.vector_store %arg9[%c0_31, %c0_32], %59 {strides = array<i32>} : memref<16x32xf32, #tpu.memory_space<vmem>>, vector<16x32xf32>,
    } else {
    }
    %c0 = arith.constant 0 : index
    %c0_1 = arith.constant 0 : index
    %3 = vector.load %arg3[%c0, %c0_1] : memref<16x32xf32, #tpu.memory_space<vmem>>, vector<16x32xf32>
    %4 = arith.truncf %3 : vector<16x32xf32> to vector<16x32xbf16>
    %c0_2 = arith.constant 0 : index
    %c0_3 = arith.constant 0 : index
    %5 = vector.load %arg4[%c0_2, %c0_3] : memref<32x128xbf16, #tpu.memory_space<vmem>>, vector<32x128xbf16>
    %cst = arith.constant dense<0.000000e+00> : vector<16x128xf32>
    %6 = tpu.matmul %4, %5, %cst {dimension_numbers = #tpu.dot_dimension_numbers<[1], [0], [0], [1], [0, 0, 1, 1], [], []>} : vector<16x32xbf16>, vector<32x128xbf16>, vector<16x128xf32> -> vector<16x128xf32>
    %c0_4 = arith.constant 0 : index
    %c0_5 = arith.constant 0 : index
    %7 = vector.load %arg5[%c0_4, %c0_5] : memref<1x128xf32, #tpu.memory_space<vmem>>, vector<1x128xf32>
    %8 = vector.broadcast %7 : vector<1x128xf32> to vector<16x128xf32>
    %9 = arith.addf %6, %8 : vector<16x128xf32>
    %cst_6 = arith.constant 5.000000e-01 : f32
    %10 = vector.broadcast %cst_6 : f32 to vector<16x128xf32>
    %11 = arith.mulf %10, %9 : vector<16x128xf32>
    %cst_7 = arith.constant 0.707106769 : f32
    %12 = vector.broadcast %cst_7 : f32 to vector<16x128xf32>
    %13 = arith.mulf %9, %12 : vector<16x128xf32>
    %cst_8 = arith.constant 0.000000e+00 : f32
    %14 = vector.broadcast %cst_8 : f32 to vector<16x128xf32>
    %15 = arith.cmpf oge, %13, %14 : vector<16x128xf32>
    %cst_9 = arith.constant 1.000000e+00 : f32
    %cst_10 = arith.constant -1.000000e+00 : f32
    %16 = vector.broadcast %cst_9 : f32 to vector<16x128xf32>
    %17 = vector.broadcast %cst_10 : f32 to vector<16x128xf32>
    %18 = arith.select %15, %16, %17 : vector<16x128xi1>, vector<16x128xf32>
    %19 = math.absf %13 : vector<16x128xf32>
    %cst_11 = arith.constant 0.327591091 : f32
    %20 = vector.broadcast %cst_11 : f32 to vector<16x128xf32>
    %21 = arith.mulf %20, %19 : vector<16x128xf32>
    %cst_12 = arith.constant 1.000000e+00 : f32
    %22 = vector.broadcast %cst_12 : f32 to vector<16x128xf32>
    %23 = arith.addf %22, %21 : vector<16x128xf32>
    %24 = tpu.reciprocal %23 {approx = true} : vector<16x128xf32> -> vector<16x128xf32>
    %cst_13 = arith.constant 1.06140542 : f32
    %25 = vector.broadcast %cst_13 : f32 to vector<16x128xf32>
    %26 = arith.mulf %25, %24 : vector<16x128xf32>
    %cst_14 = arith.constant -1.45315206 : f32
    %27 = vector.broadcast %cst_14 : f32 to vector<16x128xf32>
    %28 = arith.addf %26, %27 : vector<16x128xf32>
    %29 = arith.mulf %28, %24 : vector<16x128xf32>
    %cst_15 = arith.constant 1.42141378 : f32
    %30 = vector.broadcast %cst_15 : f32 to vector<16x128xf32>
    %31 = arith.addf %29, %30 : vector<16x128xf32>
    %32 = arith.mulf %31, %24 : vector<16x128xf32>
    %cst_16 = arith.constant -0.284496725 : f32
    %33 = vector.broadcast %cst_16 : f32 to vector<16x128xf32>
    %34 = arith.addf %32, %33 : vector<16x128xf32>
    %35 = arith.mulf %34, %24 : vector<16x128xf32>
    %cst_17 = arith.constant 0.254829586 : f32
    %36 = vector.broadcast %cst_17 : f32 to vector<16x128xf32>
    %37 = arith.addf %35, %36 : vector<16x128xf32>
    %38 = arith.mulf %37, %24 : vector<16x128xf32>
    %cst_18 = arith.constant 0.000000e+00 : f32
    %39 = vector.broadcast %cst_18 : f32 to vector<16x128xf32>
    %40 = arith.subf %39, %19 : vector<16x128xf32>
    %41 = arith.mulf %40, %19 : vector<16x128xf32>
    %42 = math.exp %41 : vector<16x128xf32>
    %43 = arith.mulf %38, %42 : vector<16x128xf32>
    %cst_19 = arith.constant 1.000000e+00 : f32
    %44 = vector.broadcast %cst_19 : f32 to vector<16x128xf32>
    %45 = arith.subf %44, %43 : vector<16x128xf32>
    %46 = arith.mulf %18, %45 : vector<16x128xf32>
    %cst_20 = arith.constant 1.000000e+00 : f32
    %47 = vector.broadcast %cst_20 : f32 to vector<16x128xf32>
    %48 = arith.addf %47, %46 : vector<16x128xf32>
    %49 = arith.mulf %11, %48 : vector<16x128xf32>
    %50 = arith.truncf %49 : vector<16x128xf32> to vector<16x128xbf16>
    %c0_21 = arith.constant 0 : index
    %c0_22 = arith.constant 0 : index
    %51 = vector.load %arg9[%c0_21, %c0_22] : memref<16x32xf32, #tpu.memory_space<vmem>>, vector<16x32xf32>
    %c0_23 = arith.constant 0 : index
    %c0_24 = arith.constant 0 : index
    %52 = vector.load %arg6[%c0_23, %c0_24] : memref<128x32xbf16, #tpu.memory_space<vmem>>, vector<128x32xbf16>
    %cst_25 = arith.constant dense<0.000000e+00> : vector<16x32xf32>
    %53 = tpu.matmul %50, %52, %cst_25 {dimension_numbers = #tpu.dot_dimension_numbers<[1], [0], [0], [1], [0, 0, 1, 1], [], []>} : vector<16x128xbf16>, vector<128x32xbf16>, vector<16x32xf32> -> vector<16x32xf32>
    %54 = arith.addf %51, %53 : vector<16x32xf32>
    %c0_26 = arith.constant 0 : index
    %c0_27 = arith.constant 0 : index
    %55 = vector.load %arg9[%c0_26, %c0_27] : memref<16x32xf32, #tpu.memory_space<vmem>>, vector<16x32xf32>
    tpu.vector_store %arg9[%c0_26, %c0_27], %54 {strides = array<i32>} : memref<16x32xf32, #tpu.memory_space<vmem>>, vector<16x32xf32>,
    %c0_i32_28 = arith.constant 0 : i32
    %56 = arith.cmpi eq, %arg2, %c0_i32_28 : i32
    %57 = arith.extui %56 : i1 to i32
    %c0_i32_29 = arith.constant 0 : i32
    %58 = arith.cmpi ne, %57, %c0_i32_29 : i32
    scf.if %58 {
      %c0_30 = arith.constant 0 : index
      %c0_31 = arith.constant 0 : index
      %59 = vector.load %arg9[%c0_30, %c0_31] : memref<16x32xf32, #tpu.memory_space<vmem>>, vector<16x32xf32>
      %c0_32 = arith.constant 0 : index
      %c0_33 = arith.constant 0 : index
      %60 = vector.load %arg7[%c0_32, %c0_33] : memref<1x32xf32, #tpu.memory_space<vmem>>, vector<1x32xf32>
      %61 = vector.broadcast %60 : vector<1x32xf32> to vector<16x32xf32>
      %62 = arith.addf %59, %61 : vector<16x32xf32>
      %c0_34 = arith.constant 0 : index
      %c0_35 = arith.constant 0 : index
      %63 = vector.load %arg8[%c0_34, %c0_35] : memref<16x32xf32, #tpu.memory_space<vmem>>, vector<16x32xf32>
      tpu.vector_store %arg8[%c0_34, %c0_35], %62 {strides = array<i32>} : memref<16x32xf32, #tpu.memory_space<vmem>>, vector<16x32xf32>,
    } else {
    }
    return
  }
  func.func @transform_0(%arg0: i32, %arg1: i32, %arg2: i32) -> (i32, i32) {
    %c0_i32 = arith.constant 0 : i32
    %c0_i32_0 = arith.constant 0 : i32
    return %arg0, %c0_i32 : i32, i32
  }
  func.func @transform_1(%arg0: i32, %arg1: i32, %arg2: i32) -> (i32, i32) {
    %c0_i32 = arith.constant 0 : i32
    %c0_i32_0 = arith.constant 0 : i32
    return %c0_i32, %arg2 : i32, i32
  }
  func.func @transform_2(%arg0: i32, %arg1: i32, %arg2: i32) -> (i32, i32) {
    %c0_i32 = arith.constant 0 : i32
    %c0_i32_0 = arith.constant 0 : i32
    return %c0_i32, %arg2 : i32, i32
  }
  func.func @transform_3(%arg0: i32, %arg1: i32, %arg2: i32) -> (i32, i32) {
    %c0_i32 = arith.constant 0 : i32
    return %arg2, %arg1 : i32, i32
  }
  func.func @transform_4(%arg0: i32, %arg1: i32, %arg2: i32) -> (i32, i32) {
    %c0_i32 = arith.constant 0 : i32
    %c0_i32_0 = arith.constant 0 : i32
    return %c0_i32, %arg1 : i32, i32
  }
  func.func @transform_5(%arg0: i32, %arg1: i32, %arg2: i32) -> (i32, i32) {
    %c0_i32 = arith.constant 0 : i32
    return %arg0, %arg1 : i32, i32
  }
}

</mosaic_0001>

<bundles_post_ra>
// kernel: tpu_custom_call.1
= control target key start
LH: loop header
LB: loop body
LE: loop exit
PB: predicated region body
PF: predicated region fallthrough
CT: control target
= control target key end

     0   :  { %v397_v1 = vmov 0.0   ;;  %vm398_vm0 = vmmov 0   ;;  %vm26_vm1 = vcmask 261120   ;;  %s494_s0 = inlined_call_operand.vmem [shape: f32[16,32], index: 0, kind: input, shape index: {}]   ;;  %s495_s1 = inlined_call_operand.vmem [shape: bf16[32,128], index: 1, kind: input, shape index: {}]   ;;  %s496_s2 = inlined_call_operand.vmem [shape: f32[1,128], index: 2, kind: input, shape index: {}]   ;;  %s497_s3 = inlined_call_operand.vmem [shape: bf16[128,32], index: 3, kind: input, shape index: {}]   ;;  %s498_s4 = inlined_call_operand.vmem [shape: f32[1,32], index: 4, kind: input, shape index: {}]   ;;  %s499_s5 = inlined_call_operand.hbm [shape: f32[16,32], index: 5, kind: output, shape index: {}]  }
   0x1   :  { %v355_v0 = vld [vmem:[%s495_s1] sm:$0xff]   ;;  %321 = vmatprep.subr.bf16.mxu0 %v397_v1  ;;  %329 = vmatprep.subr.bf16.mxu1 %v397_v1  ;;  %v356_v2 = vld [vmem:[%s495_s1 + $0x8] sm:$0xff]   ;;  %27 = vst.msk [vmem:[#allocation2] sm:$0xff] %vm26_vm1, %v397_v1  ;;  %28 = vst.msk [vmem:[#allocation2 + $0x8] sm:$0xff] %vm26_vm1, %v397_v1 }
   0x2   :  { %322 = vmatpush3.bf16.msra.mxu0 %v355_v0  ;;  %325 = vmatprep.mubr.msk.bf16.mxu0 %vm398_vm0, %v397_v1  ;;  %v29_v3 = vld [vmem:[%s494_s0] sm:$0xff]  ;;  %v30_v4 = vld [vmem:[%s494_s0 + $0x8] sm:$0xff] }
   0x3   :  { %323 = vmatprep.subr.bf16.mxu0 %v397_v1  ;;  %345 = vmatprep.mubr.msk.bf16.mxu1 %vm398_vm0, %v397_v1  ;;  %v31_v5 = vpack.c.bf16 %v30_v4, %v29_v3 }
   0x6   :  { %324 = vmatpush3.bf16.msra.mxu0 %v356_v2 }
   0x7   :  { %10 = vsyncpa [#allocation4], 0  ;;  %v357_v6 = vld [vmem:[%s497_s3] sm:$0xff]   ;;  %v358_v7 = vld [vmem:[%s497_s3 + $0x8] sm:$0xff]   ;;  %v399_v59 = vmov -1.0   ;;  %s400_s17 = smov [#allocation3]  }
   0x8   :  { %330 = vmatpush3.bf16.msra.mxu1 %v357_v6  ;;  %v359_v8 = vld [vmem:[%s497_s3 + $0x10] sm:$0xff]   ;;  %v360_v9 = vld [vmem:[%s497_s3 + $0x18] sm:$0xff]   ;;  %v361_v10 = vld [vmem:[%s497_s3 + $0x20] sm:$0xff]   ;;  %s285_s18 = sshll.u32 %s400_s17, 4  ;;  %s286_s18 = int_to_ptr.vmem [resolvable:$true] %s285_s18 }
   0x9   :  { %326 = vmatmul.mubr.msk.bf16.vlgmr.msra.gmra.mrb[0].mxu0 %vm26_vm1, %v31_v5  ;;  %331 = vmatprep.subr.bf16.mxu1 %v397_v1  ;;  %v362_v11 = vld [vmem:[%s497_s3 + $0x28] sm:$0xff]   ;;  %v363_v12 = vld [vmem:[%s497_s3 + $0x30] sm:$0xff]   ;;  %v364_v13 = vld [vmem:[%s497_s3 + $0x38] sm:$0xff]   ;;  %s373_s19 = scalar_lea.vmem %s286_s18, 256  ;;  %p378_p1 = scmp.lt.s32.totalorder %s286_s18, %s286_s18 }
   0xa   :  { %v296_v14 = vld [vmem:[%s496_s2] ss:$0 sm:$0xff]  ;;  %p374_p0 = scmp.ne.s32.totalorder %s286_s18, %s373_s19  ;;  %p379_p2 = scmp.lt.s32.totalorder %s373_s19, %s373_s19 }
   0xc   :  { %332 = vmatpush3.bf16.msra.mxu1 %v358_v7  ;;  %p380_p3 = por %p379_p2, %p378_p1 }
   0xd   :  { %333 = vmatprep.subr.bf16.mxu1 %v397_v1 }
   0xe   :  { %p381_p4 = pnand %p380_p3, %p374_p0 }
  0x10   :  { %334 = vmatpush3.bf16.msra.mxu1 %v359_v8 }
  0x11   :  { %335 = vmatprep.subr.bf16.mxu1 %v397_v1 }
  0x14   :  { %336 = vmatpush3.bf16.msra.mxu1 %v360_v9  ;;  %v153_v9 = vld [vmem:[#allocation2] sm:$0xff] }
  0x15   :  { %337 = vmatprep.subr.bf16.mxu1 %v397_v1 }
  0x18   :  { %338 = vmatpush3.bf16.msra.mxu1 %v361_v10 }
  0x19   :  { %339 = vmatprep.subr.bf16.mxu1 %v397_v1 }
  0x1c   :  { %340 = vmatpush3.bf16.msra.mxu1 %v362_v11  ;;  %v154_v11 = vld [vmem:[#allocation2 + $0x8] sm:$0xff] }
  0x1d   :  { %341 = vmatprep.subr.bf16.mxu1 %v397_v1 }
  0x20   :  { %342 = vmatpush3.bf16.msra.mxu1 %v363_v12 }
  0x21   :  { %343 = vmatprep.subr.bf16.mxu1 %v397_v1 }
  0x24   :  { %344 = vmatpush3.bf16.msra.mxu1 %v364_v13 }
  0xdc   :  { %v93_v15 = vpop.f32.mrb[0].mxu0 }
  0xdd   :  { %v94_v16 = vadd.f32 %v296_v14, %v93_v15  ;;  %v327_v17 = vpop.f32.mrb[1].mxu0 }
  0xde   :  { %v96_v18 = vpop.f32.mrb[2].mxu0 }
  0xdf   :  { %v102_v19 = vmul.f32 0.70710677, %v94_v16  ;;  %v97_v20 = vadd.f32 %v296_v14, %v96_v18  ;;  %v328_v21 = vpop.f32.mrb[3].mxu0  ;;  %v100_v3 = vmul.f32 0.5, %v94_v16  ;;  %v308_v16 = vld [vmem:[%s498_s4] ss:$0 sm:$0xff] }
  0xe1   :  { %v108_v22 = vand.u32 2147483647, %v102_v19  ;;  %v103_v23 = vmul.f32 0.70710677, %v97_v20  ;;  %vm104_vm2 = vcmp.ge.f32.partialorder %v102_v19, 0.0  ;;  %v101_v4 = vmul.f32 0.5, %v97_v20 }
  0xe2   :  { %v106_v60 = vsel %vm104_vm2, 1.0, %v399_v59 }
  0xe3   :  { %v110_v24 = vmul.f32 0.3275911, %v108_v22  ;;  %v109_v25 = vand.u32 2147483647, %v103_v23  ;;  %v134_v29 = vsub.f32 0.0, %v108_v22  ;;  %vm105_vm3 = vcmp.ge.f32.partialorder %v103_v23, 0.0 }
  0xe4   :  { %v107_v0 = vsel %vm105_vm3, 1.0, %v399_v59 }
  0xe5   :  { %v112_v26 = vadd.f32 1.0, %v110_v24  ;;  %v111_v27 = vmul.f32 0.3275911, %v109_v25  ;;  %v135_v30 = vsub.f32 0.0, %v109_v25  ;;  %v136_v32 = vmul.f32 %v134_v29, %v108_v22 }
  0xe7   :  { %365 = vrcp.f32 %v112_v26  ;;  %v113_v28 = vadd.f32 1.0, %v111_v27  ;;  %v137_v36 = vmul.f32 %v135_v30, %v109_v25  ;;  %v138_v37 = vmul.f32 1.442695, %v136_v32 }
  0xe9   :  { %367 = vrcp.f32 %v113_v28  ;;  %v140_v42 = vmul.f32 1.442695, %v137_v36 }
  0xea   :  { %369 = vpow2.f32 %v138_v37 }
  0xeb   :  { %371 = vpow2.f32 %v140_v42 }
  0xf1   :  { %v366_v31 = vpop.eup %365 }
  0xf2   :  { %v116_v33 = vmul.f32 1.0614054, %v366_v31 }
  0xf3   :  { %v368_v34 = vpop.eup %367 }
  0xf4   :  { %v118_v35 = vadd.f32 -1.4531521, %v116_v33  ;;  %v117_v38 = vmul.f32 1.0614054, %v368_v34  ;;  %v370_v53 = vpop.eup %369 }
  0xf5   :  { %v372_v57 = vpop.eup %371 }
  0xf6   :  { %v120_v39 = vmul.f32 %v366_v31, %v118_v35  ;;  %v119_v40 = vadd.f32 -1.4531521, %v117_v38 }
  0xf8   :  { %v122_v41 = vadd.f32 1.4214138, %v120_v39  ;;  %v121_v43 = vmul.f32 %v368_v34, %v119_v40 }
  0xfa   :  { %v124_v44 = vmul.f32 %v366_v31, %v122_v41  ;;  %v123_v45 = vadd.f32 1.4214138, %v121_v43 }
  0xfc   :  { %v126_v46 = vadd.f32 -0.28449672, %v124_v44  ;;  %v125_v47 = vmul.f32 %v368_v34, %v123_v45 }
  0xfe   :  { %v128_v48 = vmul.f32 %v366_v31, %v126_v46  ;;  %v127_v49 = vadd.f32 -0.28449672, %v125_v47 }
 0x100   :  { %v130_v50 = vadd.f32 0.2548296, %v128_v48  ;;  %v129_v51 = vmul.f32 %v368_v34, %v127_v49 }
 0x102   :  { %v132_v52 = vmul.f32 %v366_v31, %v130_v50  ;;  %v131_v54 = vadd.f32 0.2548296, %v129_v51 }
 0x104   :  { %v142_v55 = vmul.f32 %v370_v53, %v132_v52  ;;  %v133_v56 = vmul.f32 %v368_v34, %v131_v54 }
 0x106   :  { %v144_v58 = vsub.f32 1.0, %v142_v55  ;;  %v143_v61 = vmul.f32 %v372_v57, %v133_v56 }
 0x108   :  { %v146_v62 = vmul.f32 %v144_v58, %v106_v60  ;;  %v145_v63 = vsub.f32 1.0, %v143_v61 }
 0x10a   :  { %v148_v1 = vadd.f32 1.0, %v146_v62  ;;  %v147_v2 = vmul.f32 %v145_v63, %v107_v0 }
 0x10c   :  { %v149_v5 = vadd.f32 1.0, %v147_v2  ;;  %v150_v6 = vmul.f32 %v148_v1, %v100_v3 }
 0x10e   :  { %v151_v7 = vmul.f32 %v149_v5, %v101_v4 }
 0x110   :  { %v152_v8 = vpack.c.bf16 %v151_v7, %v150_v6 }
 0x112   :  { %346 = vmatmul.mubr.bf16.vlgmr.msra.gmra.mrb[0].mxu1 %v152_v8 }
 0x1e5   :  { %v253_v10 = vpop.f32.mrb[0].mxu1 }
 0x1e6   :  { %v260_v12 = vadd.f32 %v253_v10, %v153_v9  ;;  %v347_v13 = vpop.f32.mrb[1].mxu1 }
 0x1e7   :  { %v256_v14 = vpop.f32.mrb[2].mxu1 }
 0x1e8   :  { %262 = vst.msk [vmem:[#allocation2] sm:$0xff] %vm26_vm1, %v260_v12  ;;  %v261_v15 = vadd.f32 %v256_v14, %v154_v11  ;;  %v348_v17 = vpop.f32.mrb[3].mxu1 }
 0x1ea   :  { %263 = vst.msk [vmem:[#allocation2 + $0x8] sm:$0xff] %vm26_vm1, %v261_v15 }
 0x1ef   :  { %v267_v18 = vld [vmem:[#allocation2] sm:$0xff] }
 0x1f0   :  { %v276_v19 = vadd.f32 %v308_v16, %v267_v18 }
 0x1f1   :  { %v268_v20 = vld [vmem:[#allocation2 + $0x8] sm:$0xff] }
 0x1f2   :  { %v277_v21 = vadd.f32 %v308_v16, %v268_v20  ;;  %278 = vst.msk [vmem:[#allocation3] sm:$0xff] %vm26_vm1, %v276_v19 }
 0x1f4   :  { %279 = vst.msk [vmem:[#allocation3 + $0x8] sm:$0xff] %vm26_vm1, %v277_v21 }
 0x1f5   :  { %384 = shalt.err (!%p381_p4)
}
 0x1f6   :  { %s385_s21 = scalar_lea.hbm %s499_s5, 256 }
 0x1f7   :  { %p386_p5 = scmp.ne.s32.totalorder %s499_s5, %s385_s21  ;;  %p389_p6 = scmp.lt.u32.totalorder %s385_s21, %s499_s5 }
 0x1f9   :  { %p391_p7 = pnand %p389_p6, %p386_p5 }
 0x1fb   :  { %394 = shalt.err (!%p391_p7)
}
 0x1fc   :  { %s401_s1 = smov 128   ;;  %s402_s26 = smov 8  }
 0x1fd   :  { %291 = dma.vmem_to_hbm [thread:$0]  %s286_s18, 256, %s499_s5, [#allocation4], %s401_s1, %s401_s1, %s402_s26  }
 0x1fe   :  { %395 = dma.done.wait [#allocation4], 256  }
 0x1ff   :  { %396 = vsyncadd [#allocation4], 4294967040 }
 0x200   :  { %295 = vsyncpa [#allocation4], 1 }

</bundles_post_ra>
